<compile_context>
chip_gen: v5e
topology: v5e:2x2
jax: 0.10.0
libtpu: 0.0.40
codegen_flags: <defaults>
</compile_context>

<pallas_src>
import jax
import jax.numpy as jnp
from jax.experimental import pallas as pl
from jax.experimental.pallas import tpu as pltpu

LN_EPS = 1e-5
_GB = 8  # gather batch: 8 rows -> one full (8, 128) f32 vreg store


# --------------------------------------------------------------------------
# Stage 1: fused node projections.
#   p = node @ [W_src | W_dst]  (Dn, 2H)  ->  proj_src (bf16), proj_dst (bf16)
# Computed once per block application (hoisted out of the per-edge-tile loop).
# --------------------------------------------------------------------------
def node_proj_kernel(node_ref, wsd_ref, psrc_ref, pdst_ref):
    h = psrc_ref.shape[1]
    p = jnp.dot(node_ref[...].astype(jnp.bfloat16), wsd_ref[...],
                preferred_element_type=jnp.float32)
    # Static slices at a 128-lane boundary.
    psrc_ref[...] = p[:, :h].astype(psrc_ref.dtype)
    pdst_ref[...] = p[:, h:].astype(pdst_ref.dtype)


# --------------------------------------------------------------------------
# Stage 2: edge MLP + LayerNorm + residual, tiled over edges.
# --------------------------------------------------------------------------
def mesh_edge_kernel(src_ref, dst_ref,                       # SMEM scalar prefetch (E,)
                     edge_ref, we_ref, psrc_ref, pdst_ref, b1_ref,
                     w2_ref, b2_ref, g_ref, beta_ref,
                     out_ref, gsum_ref):
    te = edge_ref.shape[0]
    base = pl.program_id(0) * te

    # Issue the edge matmul FIRST: its MXU work overlaps the gather loop's
    # vld/vst/scalar traffic (the fori_loop is a basic-block boundary the LLO
    # scheduler will not hoist across, so statement order matters here).
    ef = edge_ref[...]                                       # (TE, De) f32
    h_edge = jnp.dot(ef.astype(jnp.bfloat16), we_ref[...],
                     preferred_element_type=jnp.float32)     # (TE, H) f32

    # Batched gather: proj_src[src[e]] + proj_dst[dst[e]] for 8 edges at a
    # time.  Indices live in SMEM (scalar prefetch, pre-clipped in the
    # wrapper); rows are dynamic (1, H) bf16 loads from the VMEM-resident
    # tables, summed in f32, stored as one aligned unmasked (8, H) f32 store.
    def gather8(rb, carry):
        r = pl.multiple_of(rb * _GB, _GB)
        off = base + r
        rows = []
        for u in range(_GB):
            s = src_ref[off + u]
            d = dst_ref[off + u]
            rows.append(psrc_ref[pl.ds(s, 1), :].astype(jnp.float32)
                        + pdst_ref[pl.ds(d, 1), :].astype(jnp.float32))
        gsum_ref[pl.ds(r, _GB), :] = jnp.concatenate(rows, axis=0)
        return carry

    jax.lax.fori_loop(0, te // _GB, gather8, 0, unroll=4)

    h = h_edge + gsum_ref[...] + b1_ref[...]

    # SiLU in f32.
    h = h * jax.nn.sigmoid(h)

    # Second linear (bf16 MXU inputs, f32 accumulation).
    y = jnp.dot(h.astype(jnp.bfloat16), w2_ref[...],
                preferred_element_type=jnp.float32) + b2_ref[...]

    # LayerNorm over the lane-dense feature dim, f32.
    mean = jnp.mean(y, axis=-1, keepdims=True)
    var = jnp.mean(jnp.square(y - mean), axis=-1, keepdims=True)
    y = (y - mean) * jax.lax.rsqrt(var + LN_EPS)
    y = y * g_ref[...] + beta_ref[...]

    # Residual.
    out_ref[...] = y + ef


def mesh_edge_block(edge_feats, node_feats, src_idx, dst_idx, params, *,
                    edge_tile=256):
    """Returns (edge_feats_new, node_feats), like MeshEdgeBlock.forward.

    edge_tile guidance: ~512 on v5e/v6e, 256-512 on v7x (64 MiB VMEM), sized
    so double-buffered (TE,De)/(TE,Do) tiles + the resident bf16 projection
    tables / weights + scratch fit the scoped VMEM limit set below.
    """
    E, De = edge_feats.shape
    Nn, Dn = node_feats.shape
    H = params["W_e"].shape[1]
    Do = params["W2"].shape[1]
    assert Do == De, "output_dim must equal edges_input_dim for the residual"
    edge_tile = min(edge_tile, E)
    assert E % edge_tile == 0 and edge_tile % _GB == 0

    # Clip indices once in the wrapper (no runtime OOB check on TPU VMEM and
    # we do not want per-row clamps inside the hot gather loop).
    src_idx = jnp.clip(src_idx.reshape(E).astype(jnp.int32), 0, Nn - 1)
    dst_idx = jnp.clip(dst_idx.reshape(E).astype(jnp.int32), 0, Nn - 1)

    # Cast matmul weights to bf16 once; fuse W_src|W_dst for a single stage-1
    # matmul (feeds the 256-wide MXU on v6e/v7x).  Biases / LN params stay f32.
    we = params["W_e"].astype(jnp.bfloat16)
    wsd = jnp.concatenate([params["W_src"], params["W_dst"]],
                          axis=1).astype(jnp.bfloat16)
    w2 = params["W2"].astype(jnp.bfloat16)

    # ---- stage 1: node projection tables (run once, tiled over nodes) ----
    tn = Nn if Nn <= 512 else 512
    assert Nn % tn == 0
    proj_src, proj_dst = pl.pallas_call(
        node_proj_kernel,
        out_shape=(jax.ShapeDtypeStruct((Nn, H), jnp.bfloat16),
                   jax.ShapeDtypeStruct((Nn, H), jnp.bfloat16)),
        grid_spec=pltpu.PrefetchScalarGridSpec(
            num_scalar_prefetch=0,
            grid=(Nn // tn,),
            in_specs=[pl.BlockSpec((tn, Dn), lambda i: (i, 0)),
                      pl.BlockSpec((Dn, 2 * H), lambda i: (0, 0))],
            out_specs=[pl.BlockSpec((tn, H), lambda i: (i, 0)),
                       pl.BlockSpec((tn, H), lambda i: (i, 0))]),
        compiler_params=pltpu.CompilerParams(
            dimension_semantics=("parallel",)),
    )(node_feats, wsd)

    # ---- explicit scoped-VMEM budget for stage 2 ----
    # Invariant blocks counted double-buffered (conservative: Mosaic may keep
    # two buffers even for constant-index-map blocks), plus double-buffered
    # edge/out tiles and the gsum scratch, with 2x slack.  Floor 32 MiB, cap
    # 64 MiB so the request is valid on every generation (incl. v7x).
    invariant_bytes = 2 * ((De * H + 2 * Nn * H + H * Do) * 2   # bf16 weights/tables
                           + (H + 3 * Do) * 4)                  # f32 biases / LN
    tile_bytes = 2 * (edge_tile * De * 4 + edge_tile * Do * 4)
    scratch_bytes = edge_tile * H * 4
    vmem_bytes = 2 * (invariant_bytes + tile_bytes + scratch_bytes)
    vmem_bytes = int(min(max(vmem_bytes, 32 * 1024 * 1024), 64 * 1024 * 1024))

    # ---- stage 2: edge MLP, tiled over edges; tables/weights resident ----
    # (input_output_aliases={2: 0} would let XLA reuse the edge_feats buffer
    #  when the caller donates it; left off here because the test reads
    #  edge_feats afterwards.)
    edge_new = pl.pallas_call(
        mesh_edge_kernel,
        out_shape=jax.ShapeDtypeStruct((E, Do), jnp.float32),
        grid_spec=pltpu.PrefetchScalarGridSpec(
            num_scalar_prefetch=2,                       # src_idx, dst_idx -> SMEM
            grid=(E // edge_tile,),
            in_specs=[pl.BlockSpec((edge_tile, De), lambda i, s, d: (i, 0)),
                      pl.BlockSpec((De, H),  lambda i, s, d: (0, 0)),
                      pl.BlockSpec((Nn, H),  lambda i, s, d: (0, 0)),
                      pl.BlockSpec((Nn, H),  lambda i, s, d: (0, 0)),
                      pl.BlockSpec((1, H),   lambda i, s, d: (0, 0)),
                      pl.BlockSpec((H, Do),  lambda i, s, d: (0, 0)),
                      pl.BlockSpec((1, Do),  lambda i, s, d: (0, 0)),
                      pl.BlockSpec((1, Do),  lambda i, s, d: (0, 0)),
                      pl.BlockSpec((1, Do),  lambda i, s, d: (0, 0))],
            out_specs=pl.BlockSpec((edge_tile, Do), lambda i, s, d: (i, 0)),
            scratch_shapes=[pltpu.VMEM((edge_tile, H), jnp.float32)]),
        compiler_params=pltpu.CompilerParams(
            dimension_semantics=("parallel",),
            vmem_limit_bytes=vmem_bytes),
    )(src_idx, dst_idx,
      edge_feats, we, proj_src, proj_dst, params["b1"],
      w2, params["b2"], params["ln_gamma"], params["ln_beta"])

    return edge_new, node_feats


# --------------------------------------------------------------------------
# Pure-JAX reference (PyTorch-faithful).  matmul_dtype / table_dtype let us
# build a reference that mirrors the kernel's bf16 rounding for a tight check,
# and an all-f32 reference for a fidelity check.
# --------------------------------------------------------------------------
def reference(edge_feats, node_feats, src_idx, dst_idx, p,
              matmul_dtype=jnp.float32, table_dtype=jnp.float32):
    c = lambda x: x.astype(matmul_dtype)
    proj_src = jnp.dot(c(node_feats), c(p["W_src"]),
                       preferred_element_type=jnp.float32)
    proj_dst = jnp.dot(c(node_feats), c(p["W_dst"]),
                       preferred_element_type=jnp.float32)
    proj_src = proj_src.astype(table_dtype).astype(jnp.float32)
    proj_dst = proj_dst.astype(table_dtype).astype(jnp.float32)
    h = (jnp.dot(c(edge_feats), c(p["W_e"]), preferred_element_type=jnp.float32)
         + proj_src[src_idx] + proj_dst[dst_idx] + p["b1"])
    h = h * jax.nn.sigmoid(h)
    y = jnp.dot(c(h), c(p["W2"]), preferred_element_type=jnp.float32) + p["b2"]
    mean = y.mean(-1, keepdims=True)
    var = ((y - mean) ** 2).mean(-1, keepdims=True)
    y = (y - mean) / jnp.sqrt(var + LN_EPS) * p["ln_gamma"] + p["ln_beta"]
    return y + edge_feats, node_feats


if __name__ == "__main__":
    # Small shapes, but lane-dense feature dims (multiples of 128).
    Nn = 64       # mesh nodes
    E = 256       # mesh edges
    Dn = 128      # nodes_input_dim
    De = 128      # edges_input_dim
    H = 128       # hidden_dim of the edge MLP
    Do = De       # output_dim (== edges_input_dim for the residual)

    key = jax.random.PRNGKey(0)
    ks = jax.random.split(key, 10)

    edge_feats = jax.random.normal(ks[0], (E, De), jnp.float32)
    node_feats = jax.random.normal(ks[1], (Nn, Dn), jnp.float32)
    src_idx = jax.random.randint(ks[2], (E,), 0, Nn, jnp.int32)
    dst_idx = jax.random.randint(ks[3], (E,), 0, Nn, jnp.int32)

    params = {
        # split first linear layer weights ([in, out] layout == x @ W)
        "W_e":   0.05 * jax.random.normal(ks[4], (De, H), jnp.float32),
        "W_src": 0.05 * jax.random.normal(ks[5], (Dn, H), jnp.float32),
        "W_dst": 0.05 * jax.random.normal(ks[6], (Dn, H), jnp.float32),
        "b1":    0.05 * jax.random.normal(ks[7], (1, H), jnp.float32),
        # final linear layer
        "W2":    0.05 * jax.random.normal(ks[8], (H, Do), jnp.float32),
        "b2":    0.05 * jax.random.normal(ks[9], (1, Do), jnp.float32),
        # LayerNorm affine params (PyTorch default init)
        "ln_gamma": jnp.ones((1, Do), jnp.float32),
        "ln_beta":  jnp.zeros((1, Do), jnp.float32),
    }

    edge_new, node_out = mesh_edge_block(edge_feats, node_feats,
                                         src_idx, dst_idx, params)
    jax.block_until_ready(edge_new)
    jax.block_until_ready(node_out)

    # Tight check vs. a reference using the same bf16 matmul inputs and bf16
    # projection tables as the kernel (f32 accumulation everywhere).
    ref_bf16, _ = reference(edge_feats, node_feats, src_idx, dst_idx, params,
                            matmul_dtype=jnp.bfloat16, table_dtype=jnp.bfloat16)
    assert jnp.allclose(edge_new, ref_bf16, atol=5e-3, rtol=5e-3), \
        float(jnp.max(jnp.abs(edge_new - ref_bf16)))

    # Looser fidelity check vs. the full-f32 reference (bf16 rounding).
    ref_f32, ref_node = reference(edge_feats, node_feats, src_idx, dst_idx,
                                  params, matmul_dtype=jnp.float32,
                                  table_dtype=jnp.float32)
    assert float(jnp.max(jnp.abs(edge_new - ref_f32))) < 1e-1
    assert jnp.allclose(node_out, ref_node)

    print("KERNEL_OK")
</pallas_src>

<mosaic_0001>
module attributes {stable_mosaic.version = 11 : i64} {
  func.func @node_proj_kernel(%arg0: i32, %arg1: memref<64x128xf32, #tpu.memory_space<vmem>>, %arg2: memref<128x256xbf16, #tpu.memory_space<vmem>>, %arg3: memref<64x128xbf16, #tpu.memory_space<vmem>>, %arg4: memref<64x128xbf16, #tpu.memory_space<vmem>>) attributes {dimension_semantics = [#tpu.dimension_semantics<parallel>], iteration_bounds = array<i64: 1>, scalar_prefetch = 0 : i64, scratch_operands = 0 : i64, tpu.core_type = #tpu.core_type<tc>, window_params = [{transform_indices = @transform_0, window_bounds = array<i64: 64, 128>}, {pipeline_mode = #tpu.pipeline_mode<synchronous>, transform_indices = @transform_1, window_bounds = array<i64: 128, 256>}, {transform_indices = @transform_2, window_bounds = array<i64: 64, 128>}, {transform_indices = @transform_3, window_bounds = array<i64: 64, 128>}]} {
    %c0 = arith.constant 0 : index
    %c0_0 = arith.constant 0 : index
    %0 = vector.load %arg1[%c0, %c0_0] : memref<64x128xf32, #tpu.memory_space<vmem>>, vector<64x128xf32>
    %1 = arith.truncf %0 : vector<64x128xf32> to vector<64x128xbf16>
    %c0_1 = arith.constant 0 : index
    %c0_2 = arith.constant 0 : index
    %2 = vector.load %arg2[%c0_1, %c0_2] : memref<128x256xbf16, #tpu.memory_space<vmem>>, vector<128x256xbf16>
    %cst = arith.constant dense<0.000000e+00> : vector<64x256xf32>
    %3 = tpu.matmul %1, %2, %cst {dimension_numbers = #tpu.dot_dimension_numbers<[1], [0], [0], [1], [0, 0, 1, 1], [], []>} : vector<64x128xbf16>, vector<128x256xbf16>, vector<64x256xf32> -> vector<64x256xf32>
    %4 = vector.extract_strided_slice %3 {offsets = [0, 0], sizes = [64, 128], strides = [1, 1]} : vector<64x256xf32> to vector<64x128xf32>
    %5 = arith.truncf %4 : vector<64x128xf32> to vector<64x128xbf16>
    %c0_3 = arith.constant 0 : index
    %c0_4 = arith.constant 0 : index
    %6 = vector.load %arg3[%c0_3, %c0_4] : memref<64x128xbf16, #tpu.memory_space<vmem>>, vector<64x128xbf16>
    tpu.vector_store %arg3[%c0_3, %c0_4], %5 {strides = array<i32>} : memref<64x128xbf16, #tpu.memory_space<vmem>>, vector<64x128xbf16>,
    %7 = vector.extract_strided_slice %3 {offsets = [0, 128], sizes = [64, 128], strides = [1, 1]} : vector<64x256xf32> to vector<64x128xf32>
    %8 = arith.truncf %7 : vector<64x128xf32> to vector<64x128xbf16>
    %c0_5 = arith.constant 0 : index
    %c0_6 = arith.constant 0 : index
    %9 = vector.load %arg4[%c0_5, %c0_6] : memref<64x128xbf16, #tpu.memory_space<vmem>>, vector<64x128xbf16>
    tpu.vector_store %arg4[%c0_5, %c0_6], %8 {strides = array<i32>} : memref<64x128xbf16, #tpu.memory_space<vmem>>, vector<64x128xbf16>,
    return
  }
  func.func @transform_0(%arg0: i32) -> (i32, i32) {
    %c0_i32 = arith.constant 0 : i32
    %c0_i32_0 = arith.constant 0 : i32
    return %arg0, %c0_i32 : i32, i32
  }
  func.func @transform_1(%arg0: i32) -> (i32, i32) {
    %c0_i32 = arith.constant 0 : i32
    %c0_i32_0 = arith.constant 0 : i32
    %c0_i32_1 = arith.constant 0 : i32
    return %c0_i32, %c0_i32_0 : i32, i32
  }
  func.func @transform_2(%arg0: i32) -> (i32, i32) {
    %c0_i32 = arith.constant 0 : i32
    %c0_i32_0 = arith.constant 0 : i32
    return %arg0, %c0_i32 : i32, i32
  }
  func.func @transform_3(%arg0: i32) -> (i32, i32) {
    %c0_i32 = arith.constant 0 : i32
    %c0_i32_0 = arith.constant 0 : i32
    return %arg0, %c0_i32 : i32, i32
  }
}

</mosaic_0001>

<bundles_post_ra>
// kernel: tpu_custom_call.1
= control target key start
LH: loop header
LB: loop body
LE: loop exit
PB: predicated region body
PF: predicated region fallthrough
CT: control target
= control target key end

     0   :  { %9 = vsyncpa [#allocation3], 0  ;;  %s577_s0 = inlined_call_operand.hbm [shape: f32[64,128], index: 0, kind: input, shape index: {}]   ;;  %s578_s1 = inlined_call_operand.hbm [shape: bf16[128,256], index: 1, kind: input, shape index: {}]   ;;  %s579_s2 = inlined_call_operand.hbm [shape: bf16[64,128], index: 2, kind: output, shape index: {0}]   ;;  %s580_s3 = inlined_call_operand.hbm [shape: bf16[64,128], index: 3, kind: output, shape index: {1}]  }
   0x1   :  { %10 = vsyncpa [#allocation6], 0 }
   0x2   :  { %11 = vsyncpa [#allocation4], 0 }
   0x3   :  { %12 = vsyncpa [#allocation9], 0  ;;  %s17_s14 = sshll.u32 %s577_s0, 4  ;;  %s537_s15 = smov [#allocation2]   ;;  %s18_s14 = int_to_ptr.hbm [resolvable:$true] %s17_s14 }
   0x4   :  { %s19_s16 = sshll.u32 %s537_s15, 4  ;;  %s30_s19 = sshll.u32 %s578_s1, 4  ;;  %s20_s16 = int_to_ptr.vmem [resolvable:$true] %s19_s16  ;;  %s31_s19 = int_to_ptr.hbm [resolvable:$true] %s30_s19 }
   0x5   :  { %s538_s20 = smov 128   ;;  %s539_s21 = smov 8  }
   0x6   :  { %25 = dma.hbm_to_vmem [thread:$0]  %s18_s14, 1024, %s20_s16, [#allocation3], %s538_s20, %s538_s20, %s539_s21  }
   0x7   :  { %s540_s22 = smov [#allocation5]  }
   0x8   :  { %s32_s23 = sshll.u32 %s540_s22, 4  ;;  %s33_s23 = int_to_ptr.vmem [resolvable:$true] %s32_s23 }
   0x9   :  { %38 = dma.hbm_to_vmem [thread:$0]  %s31_s19, 2048, %s33_s23, [#allocation6], %s538_s20, %s538_s20, %s539_s21  }
   0xa   :  { %529 = dma.done.wait [#allocation3], 1024  }
   0xb   :  { %530 = vsyncadd [#allocation3], 4294966272 }
   0xc   :  { %531 = dma.done.wait [#allocation6], 2048  }
   0xd   :  { %532 = vsyncadd [#allocation6], 4294965248  ;;  %v341_v0 = vld [vmem:[#allocation5 + $0x70] sm:$0xf]  ;;  %v362_v1 = vld [vmem:[#allocation5 + $0x74] sm:$0xf0] }
   0xe   :  { %v361_v2 = vld [vmem:[#allocation5 + $0x74] sm:$0xf]  ;;  %v342_v3 = vor.u32 %v362_v1, %v341_v0  ;;  %v343_v4 = vld [vmem:[#allocation5 + $0x78] sm:$0xf0]  ;;  %v333_v5 = vld [vmem:[#allocation5 + $0x60] sm:$0xf] }
   0xf   :  { %v360_v6 = vld [vmem:[#allocation5 + $0x64] sm:$0xf0]  ;;  %v346_v7 = vor.u32 %v361_v2, %v343_v4  ;;  %v359_v8 = vld [vmem:[#allocation5 + $0x64] sm:$0xf]  ;;  %v335_v9 = vld [vmem:[#allocation5 + $0x68] sm:$0xf0] }
  0x10   :  { %155 = vmatpush.bf16.msra.mxu0 %v342_v3  ;;  %409 = vmatpush.bf16.msra.mxu2 %v342_v3  ;;  %v334_v10 = vor.u32 %v360_v6, %v333_v5  ;;  %v338_v11 = vor.u32 %v359_v8, %v335_v9  ;;  %v325_v12 = vld [vmem:[#allocation5 + $0x50] sm:$0xf]  ;;  %v358_v13 = vld [vmem:[#allocation5 + $0x54] sm:$0xf0]  ;;  %v357_v14 = vld [vmem:[#allocation5 + $0x54] sm:$0xf] }
  0x11   :  { %184 = vmatpush.bf16.msra.mxu1 %v346_v7  ;;  %417 = vmatpush.bf16.msra.mxu3 %v346_v7  ;;  %v327_v15 = vld [vmem:[#allocation5 + $0x58] sm:$0xf0]  ;;  %v326_v16 = vor.u32 %v358_v13, %v325_v12  ;;  %v317_v18 = vld [vmem:[#allocation5 + $0x40] sm:$0xf]  ;;  %v356_v19 = vld [vmem:[#allocation5 + $0x44] sm:$0xf0] }
  0x12   :  { %v330_v17 = vor.u32 %v357_v14, %v327_v15  ;;  %v355_v20 = vld [vmem:[#allocation5 + $0x44] sm:$0xf]  ;;  %v319_v21 = vld [vmem:[#allocation5 + $0x48] sm:$0xf0]  ;;  %v318_v22 = vor.u32 %v356_v19, %v317_v18  ;;  %v309_v24 = vld [vmem:[#allocation5 + $0x30] sm:$0xf] }
  0x13   :  { %v322_v23 = vor.u32 %v355_v20, %v319_v21  ;;  %v354_v25 = vld [vmem:[#allocation5 + $0x34] sm:$0xf0]  ;;  %v353_v26 = vld [vmem:[#allocation5 + $0x34] sm:$0xf]  ;;  %v311_v27 = vld [vmem:[#allocation5 + $0x38] sm:$0xf0] }
  0x14   :  { %156 = vmatpush.bf16.msra.mxu0 %v334_v10  ;;  %410 = vmatpush.bf16.msra.mxu2 %v334_v10  ;;  %v310_v28 = vor.u32 %v354_v25, %v309_v24  ;;  %v314_v29 = vor.u32 %v353_v26, %v311_v27  ;;  %v301_v30 = vld [vmem:[#allocation5 + $0x20] sm:$0xf]  ;;  %v352_v31 = vld [vmem:[#allocation5 + $0x24] sm:$0xf0]  ;;  %v351_v32 = vld [vmem:[#allocation5 + $0x24] sm:$0xf] }
  0x15   :  { %185 = vmatpush.bf16.msra.mxu1 %v338_v11  ;;  %418 = vmatpush.bf16.msra.mxu3 %v338_v11  ;;  %v303_v33 = vld [vmem:[#allocation5 + $0x28] sm:$0xf0]  ;;  %v302_v34 = vor.u32 %v352_v31, %v301_v30  ;;  %v293_v36 = vld [vmem:[#allocation5 + $0x10] sm:$0xf]  ;;  %v350_v37 = vld [vmem:[#allocation5 + $0x14] sm:$0xf0] }
  0x16   :  { %v306_v35 = vor.u32 %v351_v32, %v303_v33  ;;  %v349_v38 = vld [vmem:[#allocation5 + $0x14] sm:$0xf]  ;;  %v295_v39 = vld [vmem:[#allocation5 + $0x18] sm:$0xf0]  ;;  %v294_v40 = vor.u32 %v350_v37, %v293_v36  ;;  %v285_v42 = vld [vmem:[#allocation5] sm:$0xf] }
  0x17   :  { %v298_v41 = vor.u32 %v349_v38, %v295_v39  ;;  %v348_v43 = vld [vmem:[#allocation5 + $0x4] sm:$0xf0]  ;;  %v347_v44 = vld [vmem:[#allocation5 + $0x4] sm:$0xf]  ;;  %v287_v45 = vld [vmem:[#allocation5 + $0x8] sm:$0xf0] }
  0x18   :  { %157 = vmatpush.bf16.msra.mxu0 %v326_v16  ;;  %411 = vmatpush.bf16.msra.mxu2 %v326_v16  ;;  %v47_v46 = vld [vmem:[#allocation2] sm:$0xff]  ;;  %v286_v47 = vor.u32 %v348_v43, %v285_v42  ;;  %v48_v48 = vld [vmem:[#allocation2 + $0x8] sm:$0xff]  ;;  %v290_v51 = vor.u32 %v347_v44, %v287_v45  ;;  %v49_v54 = vld [vmem:[#allocation2 + $0x10] sm:$0xff]  ;;  %s541_s0 = smov [#allocation7]   ;;  %s251_s26 = sshll.u32 %s579_s2, 4  ;;  %s252_s26 = int_to_ptr.hbm [resolvable:$true] %s251_s26 }
  0x19   :  { %186 = vmatpush.bf16.msra.mxu1 %v330_v17  ;;  %419 = vmatpush.bf16.msra.mxu3 %v330_v17  ;;  %v51_v49 = vld [vmem:[#allocation2 + $0x20] sm:$0xff]  ;;  %v52_v50 = vld [vmem:[#allocation2 + $0x28] sm:$0xff]  ;;  %v55_v52 = vpack.c.bf16 %v48_v48, %v47_v46  ;;  %v50_v55 = vld [vmem:[#allocation2 + $0x18] sm:$0xff]  ;;  %s249_s1 = sshll.u32 %s541_s0, 4  ;;  %s542_s27 = smov [#allocation8]   ;;  %s250_s1 = int_to_ptr.vmem [resolvable:$true] %s249_s1 }
  0x1a   :  { %v57_v53 = vpack.c.bf16 %v52_v50, %v51_v49  ;;  %v53_v56 = vld [vmem:[#allocation2 + $0x30] sm:$0xff]  ;;  %v54_v57 = vld [vmem:[#allocation2 + $0x38] sm:$0xff]  ;;  %v56_v58 = vpack.c.bf16 %v50_v55, %v49_v54  ;;  %s262_s28 = sshll.u32 %s542_s27, 4  ;;  %s264_s4 = sshll.u32 %s580_s3, 4  ;;  %s263_s28 = int_to_ptr.vmem [resolvable:$true] %s262_s28  ;;  %s265_s4 = int_to_ptr.hbm [resolvable:$true] %s264_s4 }
  0x1b   :  { %v58_v59 = vpack.c.bf16 %v54_v57, %v53_v56  ;;  %s543_s5 = smov 64   ;;  %s544_s6 = smov 4  }
  0x1c   :  { %158 = vmatpush.bf16.msra.mxu0 %v318_v22  ;;  %412 = vmatpush.bf16.msra.mxu2 %v318_v22 }
  0x1d   :  { %187 = vmatpush.bf16.msra.mxu1 %v322_v23  ;;  %420 = vmatpush.bf16.msra.mxu3 %v322_v23 }
  0x20   :  { %159 = vmatpush.bf16.msra.mxu0 %v310_v28  ;;  %413 = vmatpush.bf16.msra.mxu2 %v310_v28 }
  0x21   :  { %188 = vmatpush.bf16.msra.mxu1 %v314_v29  ;;  %421 = vmatpush.bf16.msra.mxu3 %v314_v29 }
  0x24   :  { %160 = vmatpush.bf16.msra.mxu0 %v302_v34  ;;  %414 = vmatpush.bf16.msra.mxu2 %v302_v34 }
  0x25   :  { %189 = vmatpush.bf16.msra.mxu1 %v306_v35  ;;  %422 = vmatpush.bf16.msra.mxu3 %v306_v35 }
  0x28   :  { %161 = vmatpush.bf16.msra.mxu0 %v294_v40  ;;  %415 = vmatpush.bf16.msra.mxu2 %v294_v40 }
  0x29   :  { %190 = vmatpush.bf16.msra.mxu1 %v298_v41  ;;  %423 = vmatpush.bf16.msra.mxu3 %v298_v41 }
  0x2c   :  { %162 = vmatpush.bf16.msra.mxu0 %v286_v47  ;;  %416 = vmatpush.bf16.msra.mxu2 %v286_v47 }
  0x2d   :  { %191 = vmatpush.bf16.msra.mxu1 %v290_v51  ;;  %424 = vmatpush.bf16.msra.mxu3 %v290_v51 }
  0x2f   :  { %163 = vmatmul.bf16.vlgmr.msra.gmra.mxu0 %v55_v52  ;;  %173 = vmatmul.bf16.vlgmr.msra.gmra.mxu2 %v57_v53 }
  0x30   :  { %192 = vmatmul.bf16.vlgmr.msra.gmra.mxu1 %v55_v52  ;;  %202 = vmatmul.bf16.vlgmr.msra.gmra.mxu3 %v57_v53 }
  0x3f   :  { %168 = vmatmul.bf16.gmra.mxu0 %v56_v58  ;;  %178 = vmatmul.bf16.gmra.mxu2 %v58_v59 }
  0x40   :  { %197 = vmatmul.bf16.gmra.mxu1 %v56_v58  ;;  %207 = vmatmul.bf16.gmra.mxu3 %v58_v59 }
  0xac   :  { %v164_v60 = vpop.f32.mrf.mxu0 }
  0xad   :  { %v193_v61 = vpop.f32.mrf.mxu1 }
  0xb2   :  { %v174_v62 = vpop.f32.mrf.mxu2 }
  0xb3   :  { %v203_v63 = vpop.f32.mrf.mxu3 }
  0xb4   :  { %v166_v0 = vpop.f32.mrf.mxu0 }
  0xb5   :  { %v366_v1 = vpack.c.bf16 %v166_v0, %v164_v60  ;;  %v195_v2 = vpop.f32.mrf.mxu1 }
  0xb6   :  { %v386_v3 = vpack.c.bf16 %v195_v2, %v193_v61 }
  0xb7   :  { %367 = vst [vmem:[#allocation7] sm:$0xff] %v366_v1  }
  0xb8   :  { %387 = vst [vmem:[#allocation8] sm:$0xff] %v386_v3  }
  0xba   :  { %v176_v4 = vpop.f32.mrf.mxu2 }
  0xbb   :  { %v376_v5 = vpack.c.bf16 %v176_v4, %v174_v62  ;;  %v205_v6 = vpop.f32.mrf.mxu3 }
  0xbc   :  { %v396_v7 = vpack.c.bf16 %v205_v6, %v203_v63  ;;  %v169_v8 = vpop.f32.mrf.mxu0 }
  0xbd   :  { %404 = vst [vmem:[#allocation7 + $0x10] sm:$0xff] %v376_v5   ;;  %v198_v9 = vpop.f32.mrf.mxu1 }
  0xbe   :  { %407 = vst [vmem:[#allocation8 + $0x10] sm:$0xff] %v396_v7  }
  0xc2   :  { %v179_v10 = vpop.f32.mrf.mxu2 }
  0xc3   :  { %v208_v11 = vpop.f32.mrf.mxu3 }
  0xc4   :  { %v171_v12 = vpop.f32.mrf.mxu0 }
  0xc5   :  { %v371_v13 = vpack.c.bf16 %v171_v12, %v169_v8  ;;  %v200_v14 = vpop.f32.mrf.mxu1 }
  0xc6   :  { %v391_v15 = vpack.c.bf16 %v200_v14, %v198_v9 }
  0xc7   :  { %403 = vst [vmem:[#allocation7 + $0x8] sm:$0xff] %v371_v13  }
  0xc8   :  { %406 = vst [vmem:[#allocation8 + $0x8] sm:$0xff] %v391_v15  }
  0xca   :  { %v181_v16 = vpop.f32.mrf.mxu2 }
  0xcb   :  { %v381_v17 = vpack.c.bf16 %v181_v16, %v179_v10  ;;  %v210_v18 = vpop.f32.mrf.mxu3 }
  0xcc   :  { %v401_v19 = vpack.c.bf16 %v210_v18, %v208_v11 }
  0xcd   :  { %405 = vst [vmem:[#allocation7 + $0x18] sm:$0xff] %v381_v17  }
  0xce   :  { %408 = vst [vmem:[#allocation8 + $0x18] sm:$0xff] %v401_v19   ;;  %257 = dma.vmem_to_hbm [thread:$0]  %s250_s1, 512, %s252_s26, [#allocation4], %s543_s5, %s543_s5, %s544_s6  }
  0xcf   :  { %270 = dma.vmem_to_hbm [thread:$0]  %s263_s28, 512, %s265_s4, [#allocation9], %s543_s5, %s543_s5, %s544_s6  }
  0xd0   :  { %533 = dma.done.wait [#allocation4], 512  }
  0xd1   :  { %534 = vsyncadd [#allocation4], 4294966784 }
  0xd2   :  { %535 = dma.done.wait [#allocation9], 512  }
  0xd3   :  { %536 = vsyncadd [#allocation9], 4294966784 }
  0xd4   :  { %279 = vsyncpa [#allocation3], 1 }
  0xd5   :  { %280 = vsyncpa [#allocation6], 1 }
  0xd6   :  { %281 = vsyncpa [#allocation4], 1 }
  0xd7   :  { %282 = vsyncpa [#allocation9], 1 }

</bundles_post_ra>
